<compile_context>
chip_gen: v7x
topology: tpu7x:2x2x1
jax: 0.10.0
libtpu: 0.0.40
codegen_flags: <defaults>
</compile_context>

<pallas_src>
import jax
import jax.numpy as jnp
from jax.experimental import pallas as pl
from jax.experimental.pallas import tpu as pltpu

IN_FEATURES = 2
HIDDEN = 5
OUT_FEATURES = 1

K_PAD = 8       # contraction (sublane) padding: multiple of 8 is enough
N_PAD = 128     # output lane padding: keep 128 for unmasked lane-dense stores
TB = 256        # batch tile (rows per grid step)


def _fused_linear_kernel(x_ref, w_ref, b_ref, o_ref):
    # x_ref: (TB, K_PAD)   padded input rows, real data in [:, :IN_FEATURES]
    # w_ref: (K_PAD, N_PAD) folded weight W1@W2, real in [:IN_FEATURES, :OUT_FEATURES]
    # b_ref: (1, N_PAD)    folded bias b1@W2+b2, real in [:, :OUT_FEATURES]
    # o_ref: (TB, N_PAD)   padded output, real in [:, :OUT_FEATURES]
    y = jnp.dot(x_ref[...], w_ref[...], preferred_element_type=jnp.float32)
    o_ref[...] = (y + b_ref[...]).astype(o_ref.dtype)


def _pad_to(a, shape):
    pads = [(0, t - s) for s, t in zip(a.shape, shape)]
    return jnp.pad(a, pads)


def prepare_params(params):
    """Fold the two affine layers and pad once; cache the returned arrays."""
    w1, b1, w2, b2 = params["w1"], params["b1"], params["w2"], params["b2"]
    # Exact fold (no activation between layers).
    w_fold = w1 @ w2                      # (IN_FEATURES, OUT_FEATURES)
    b_fold = b1 @ w2 + b2                 # (OUT_FEATURES,)
    w_p = _pad_to(w_fold.astype(jnp.float32), (K_PAD, N_PAD))
    b_p = _pad_to(b_fold.reshape(1, -1).astype(jnp.float32), (1, N_PAD))
    return {"w_p": jax.device_put(w_p), "b_p": jax.device_put(b_p)}


def circle_model_v0(x, prepared):
    """x: (N, 2) float32. Returns (N, 1) float32."""
    n = x.shape[0]
    n_tiles = pl.cdiv(n, TB)
    b_pad = n_tiles * TB

    # Only the activation is padded per call (zero padding is exact for affine).
    x_p = _pad_to(x.astype(jnp.float32), (b_pad, K_PAD))

    out_p = pl.pallas_call(
        _fused_linear_kernel,
        out_shape=jax.ShapeDtypeStruct((b_pad, N_PAD), jnp.float32),
        grid_spec=pltpu.PrefetchScalarGridSpec(
            num_scalar_prefetch=0,
            grid=(n_tiles,),
            in_specs=[
                pl.BlockSpec((TB, K_PAD), lambda i: (i, 0)),     # x tiles over batch
                pl.BlockSpec((K_PAD, N_PAD), lambda i: (0, 0)),  # weight resident
                pl.BlockSpec((1, N_PAD), lambda i: (0, 0)),      # bias resident
            ],
            out_specs=pl.BlockSpec((TB, N_PAD), lambda i: (i, 0)),
        ),
        compiler_params=pltpu.CompilerParams(
            dimension_semantics=("parallel",),   # megacore splits the batch grid
        ),
    )(x_p, prepared["w_p"], prepared["b_p"])

    return out_p[:n, :OUT_FEATURES]


def init_params(key):
    """Deterministic init mimicking PyTorch's U(-1/sqrt(fan_in), 1/sqrt(fan_in))."""
    k1, k2, k3, k4 = jax.random.split(key, 4)
    bound1 = 1.0 / jnp.sqrt(IN_FEATURES)
    bound2 = 1.0 / jnp.sqrt(HIDDEN)
    # Stored as (in_features, out_features), i.e. PyTorch weight transposed.
    w1 = jax.random.uniform(k1, (IN_FEATURES, HIDDEN), jnp.float32, -bound1, bound1)
    b1 = jax.random.uniform(k2, (HIDDEN,), jnp.float32, -bound1, bound1)
    w2 = jax.random.uniform(k3, (HIDDEN, OUT_FEATURES), jnp.float32, -bound2, bound2)
    b2 = jax.random.uniform(k4, (OUT_FEATURES,), jnp.float32, -bound2, bound2)
    return {"w1": w1, "b1": b1, "w2": w2, "b2": b2}


if __name__ == "__main__":
    key = jax.random.PRNGKey(0)
    pkey, xkey1, xkey2 = jax.random.split(key, 3)
    params = init_params(pkey)
    prepared = prepare_params(params)   # folded + padded once, reused per call

    def reference(x):
        return (x @ params["w1"] + params["b1"]) @ params["w2"] + params["b2"]

    # Small input consistent with the module: batch=8, in_features=2.
    x_small = jax.random.normal(xkey1, (8, IN_FEATURES), dtype=jnp.float32)
    out_small = jax.block_until_ready(circle_model_v0(x_small, prepared))
    assert out_small.shape == (8, OUT_FEATURES)
    assert jnp.allclose(out_small, reference(x_small), atol=1e-5, rtol=1e-5)

    # Tutorial-scale batch (~1000 points) exercising the multi-tile batch grid.
    x_big = jax.random.normal(xkey2, (1000, IN_FEATURES), dtype=jnp.float32)
    out_big = jax.block_until_ready(circle_model_v0(x_big, prepared))
    assert out_big.shape == (1000, OUT_FEATURES)
    assert jnp.allclose(out_big, reference(x_big), atol=1e-5, rtol=1e-5)

    print("KERNEL_OK")
</pallas_src>

<mosaic_0001>
module attributes {stable_mosaic.version = 11 : i64} {
  func.func @_fused_linear_kernel(%arg0: i32, %arg1: memref<256x8xf32, #tpu.memory_space<vmem>>, %arg2: memref<8x128xf32, #tpu.memory_space<vmem>>, %arg3: memref<1x128xf32, #tpu.memory_space<vmem>>, %arg4: memref<256x128xf32, #tpu.memory_space<vmem>>) attributes {dimension_semantics = [#tpu.dimension_semantics<parallel>], iteration_bounds = array<i64: 1>, scalar_prefetch = 0 : i64, scratch_operands = 0 : i64, tpu.core_type = #tpu.core_type<tc>, window_params = [{transform_indices = @transform_0, window_bounds = array<i64: 256, 8>}, {pipeline_mode = #tpu.pipeline_mode<synchronous>, transform_indices = @transform_1, window_bounds = array<i64: 8, 128>}, {pipeline_mode = #tpu.pipeline_mode<synchronous>, transform_indices = @transform_2, window_bounds = array<i64: 1, 128>}, {transform_indices = @transform_3, window_bounds = array<i64: 256, 128>}]} {
    %c0 = arith.constant 0 : index
    %c0_0 = arith.constant 0 : index
    %0 = vector.load %arg1[%c0, %c0_0] : memref<256x8xf32, #tpu.memory_space<vmem>>, vector<256x8xf32>
    %c0_1 = arith.constant 0 : index
    %c0_2 = arith.constant 0 : index
    %1 = vector.load %arg2[%c0_1, %c0_2] : memref<8x128xf32, #tpu.memory_space<vmem>>, vector<8x128xf32>
    %cst = arith.constant dense<0.000000e+00> : vector<256x128xf32>
    %2 = tpu.matmul %0, %1, %cst {dimension_numbers = #tpu.dot_dimension_numbers<[1], [0], [0], [1], [0, 0, 1, 1], [], []>} : vector<256x8xf32>, vector<8x128xf32>, vector<256x128xf32> -> vector<256x128xf32>
    %c0_3 = arith.constant 0 : index
    %c0_4 = arith.constant 0 : index
    %3 = vector.load %arg3[%c0_3, %c0_4] : memref<1x128xf32, #tpu.memory_space<vmem>>, vector<1x128xf32>
    %4 = vector.broadcast %3 : vector<1x128xf32> to vector<256x128xf32>
    %5 = arith.addf %2, %4 : vector<256x128xf32>
    %c0_5 = arith.constant 0 : index
    %c0_6 = arith.constant 0 : index
    %6 = vector.load %arg4[%c0_5, %c0_6] : memref<256x128xf32, #tpu.memory_space<vmem>>, vector<256x128xf32>
    tpu.vector_store %arg4[%c0_5, %c0_6], %5 {strides = array<i32>} : memref<256x128xf32, #tpu.memory_space<vmem>>, vector<256x128xf32>,
    return
  }
  func.func @transform_0(%arg0: i32) -> (i32, i32) {
    %c0_i32 = arith.constant 0 : i32
    %c0_i32_0 = arith.constant 0 : i32
    return %arg0, %c0_i32 : i32, i32
  }
  func.func @transform_1(%arg0: i32) -> (i32, i32) {
    %c0_i32 = arith.constant 0 : i32
    %c0_i32_0 = arith.constant 0 : i32
    %c0_i32_1 = arith.constant 0 : i32
    return %c0_i32, %c0_i32_0 : i32, i32
  }
  func.func @transform_2(%arg0: i32) -> (i32, i32) {
    %c0_i32 = arith.constant 0 : i32
    %c0_i32_0 = arith.constant 0 : i32
    %c0_i32_1 = arith.constant 0 : i32
    return %c0_i32, %c0_i32_0 : i32, i32
  }
  func.func @transform_3(%arg0: i32) -> (i32, i32) {
    %c0_i32 = arith.constant 0 : i32
    %c0_i32_0 = arith.constant 0 : i32
    return %arg0, %c0_i32 : i32, i32
  }
}

</mosaic_0001>

<bundles_post_ra>
// kernel: tpu_custom_call.1
= control target key start
LH: loop header
LB: loop body
LE: loop exit
PB: predicated region body
PF: predicated region fallthrough
CT: control target
= control target key end

     0   :  { %vm55_vm0 = vcmask 64512   ;;  %s773_s0 = inlined_call_operand.vmem [shape: f32[256,8], index: 0, kind: input, shape index: {}]   ;;  %s774_s1 = inlined_call_operand.vmem [shape: f32[8,128], index: 1, kind: input, shape index: {}]   ;;  %s775_s2 = inlined_call_operand.vmem [shape: f32[1,128], index: 2, kind: input, shape index: {}]   ;;  %s776_s3 = inlined_call_operand.hbm [shape: f32[256,128], index: 3, kind: output, shape index: {}]  }
   0x1   :  { %v47_v0 = vld [vmem:[%s774_s1] sm:$0xff]  ;;  %v16_v3 = vld [vmem:[%s773_s0 + $0x8] sm:$0xff]  ;;  %v17_v5 = vld [vmem:[%s773_s0 + $0x10] sm:$0xff] }
   0x2   :  { %v15_v1 = vld [vmem:[%s773_s0] sm:$0xff]  ;;  %491 = vmatprep.subr.mxu0 %v47_v0  ;;  %541 = vmatprep.subr.mxu1 %v47_v0  ;;  %v32_v4 = vld [vmem:[%s773_s0 + $0x88] sm:$0xff]  ;;  %v33_v6 = vld [vmem:[%s773_s0 + $0x90] sm:$0xff] }
   0x3   :  { %v31_v2 = vld [vmem:[%s773_s0 + $0x80] sm:$0xff]  ;;  %492 = vmatpush3.msra.mxu0 %v47_v0  ;;  %542 = vmatpush3.msra.mxu1 %v47_v0  ;;  %v18_v7 = vld [vmem:[%s773_s0 + $0x18] sm:$0xff]  ;;  %v20_v11 = vld [vmem:[%s773_s0 + $0x28] sm:$0xff] }
   0x4   :  { %493 = vmatprep.mubr.msk.f32.mxu0 %vm55_vm0, %v15_v1  ;;  %517 = vmatprep.mubr.msk.f32.mxu1 %vm55_vm0, %v31_v2  ;;  %v34_v8 = vld [vmem:[%s773_s0 + $0x98] sm:$0xff]  ;;  %v19_v9 = vld [vmem:[%s773_s0 + $0x20] sm:$0xff]  ;;  %v36_v12 = vld [vmem:[%s773_s0 + $0xa8] sm:$0xff] }
   0x5   :  { %494 = vmatmul.mubr.msk.f32.vlgmr.msra.gmra.mrb[0].mxu0 %vm55_vm0, %v16_v3  ;;  %518 = vmatmul.mubr.msk.f32.vlgmr.msra.gmra.mrb[0].mxu1 %vm55_vm0, %v32_v4  ;;  %v35_v10 = vld [vmem:[%s773_s0 + $0xa0] sm:$0xff]  ;;  %v21_v13 = vld [vmem:[%s773_s0 + $0x30] sm:$0xff] }
   0x6   :  { %496 = vmatprep.mubr.msk.f32.mxu0 %vm55_vm0, %v17_v5  ;;  %520 = vmatprep.mubr.msk.f32.mxu1 %vm55_vm0, %v33_v6  ;;  %v37_v14 = vld [vmem:[%s773_s0 + $0xb0] sm:$0xff] }
   0x9   :  { %497 = vmatmul.mubr.msk.f32.gmra.mrb[2].mxu0 %vm55_vm0, %v18_v7  ;;  %521 = vmatmul.mubr.msk.f32.gmra.mrb[2].mxu1 %vm55_vm0, %v34_v8 }
   0xa   :  { %499 = vmatprep.mubr.msk.f32.mxu0 %vm55_vm0, %v19_v9  ;;  %523 = vmatprep.mubr.msk.f32.mxu1 %vm55_vm0, %v35_v10 }
   0xb   :  { %8 = vsyncpa [#allocation3], 0  ;;  %v22_v15 = vld [vmem:[%s773_s0 + $0x38] sm:$0xff]  ;;  %v23_v17 = vld [vmem:[%s773_s0 + $0x40] sm:$0xff] }
   0xc   :  { %v38_v16 = vld [vmem:[%s773_s0 + $0xb8] sm:$0xff]  ;;  %v39_v18 = vld [vmem:[%s773_s0 + $0xc0] sm:$0xff]  ;;  %v24_v19 = vld [vmem:[%s773_s0 + $0x48] sm:$0xff] }
   0xd   :  { %500 = vmatmul.mubr.msk.f32.gmra.mrb[4].mxu0 %vm55_vm0, %v20_v11  ;;  %524 = vmatmul.mubr.msk.f32.gmra.mrb[4].mxu1 %vm55_vm0, %v36_v12  ;;  %v40_v20 = vld [vmem:[%s773_s0 + $0xc8] sm:$0xff]  ;;  %v25_v21 = vld [vmem:[%s773_s0 + $0x50] sm:$0xff]  ;;  %v26_v23 = vld [vmem:[%s773_s0 + $0x58] sm:$0xff] }
   0xe   :  { %502 = vmatprep.mubr.msk.f32.mxu0 %vm55_vm0, %v21_v13  ;;  %526 = vmatprep.mubr.msk.f32.mxu1 %vm55_vm0, %v37_v14  ;;  %v41_v22 = vld [vmem:[%s773_s0 + $0xd0] sm:$0xff]  ;;  %v42_v24 = vld [vmem:[%s773_s0 + $0xd8] sm:$0xff]  ;;  %v27_v25 = vld [vmem:[%s773_s0 + $0x60] sm:$0xff] }
   0xf   :  { %v43_v26 = vld [vmem:[%s773_s0 + $0xe0] sm:$0xff]  ;;  %v28_v27 = vld [vmem:[%s773_s0 + $0x68] sm:$0xff]  ;;  %v29_v29 = vld [vmem:[%s773_s0 + $0x70] sm:$0xff] }
  0x10   :  { %v44_v28 = vld [vmem:[%s773_s0 + $0xe8] sm:$0xff]  ;;  %v45_v30 = vld [vmem:[%s773_s0 + $0xf0] sm:$0xff]  ;;  %v30_v31 = vld [vmem:[%s773_s0 + $0x78] sm:$0xff] }
  0x11   :  { %503 = vmatmul.mubr.msk.f32.gmra.mrb[6].mxu0 %vm55_vm0, %v22_v15  ;;  %527 = vmatmul.mubr.msk.f32.gmra.mrb[6].mxu1 %vm55_vm0, %v38_v16  ;;  %v46_v32 = vld [vmem:[%s773_s0 + $0xf8] sm:$0xff]  ;;  %v727_v33 = vld [vmem:[%s775_s2] ss:$0 sm:$0xff]  ;;  %s570_s0 = smov [#allocation2]  }
  0x12   :  { %505 = vmatprep.mubr.msk.f32.mxu0 %vm55_vm0, %v23_v17  ;;  %529 = vmatprep.mubr.msk.f32.mxu1 %vm55_vm0, %v39_v18  ;;  %s414_s2 = sshll.u32 %s570_s0, 4  ;;  %s415_s2 = int_to_ptr.vmem [resolvable:$true] %s414_s2 }
  0x13   :  { %s546_s23 = scalar_lea.vmem %s415_s2, 4096  ;;  %p551_p1 = scmp.lt.s32.totalorder %s415_s2, %s415_s2 }
  0x14   :  { %p547_p0 = scmp.ne.s32.totalorder %s415_s2, %s546_s23  ;;  %p552_p2 = scmp.lt.s32.totalorder %s546_s23, %s546_s23 }
  0x15   :  { %506 = vmatmul.mubr.msk.f32.gmra.mrb[8].mxu0 %vm55_vm0, %v24_v19  ;;  %530 = vmatmul.mubr.msk.f32.gmra.mrb[8].mxu1 %vm55_vm0, %v40_v20 }
  0x16   :  { %508 = vmatprep.mubr.msk.f32.mxu0 %vm55_vm0, %v25_v21  ;;  %532 = vmatprep.mubr.msk.f32.mxu1 %vm55_vm0, %v41_v22  ;;  %p553_p3 = por %p552_p2, %p551_p1 }
  0x18   :  { %p554_p4 = pnand %p553_p3, %p547_p0 }
  0x19   :  { %509 = vmatmul.mubr.msk.f32.gmra.mrb[10].mxu0 %vm55_vm0, %v26_v23  ;;  %533 = vmatmul.mubr.msk.f32.gmra.mrb[10].mxu1 %vm55_vm0, %v42_v24 }
  0x1a   :  { %511 = vmatprep.mubr.msk.f32.mxu0 %vm55_vm0, %v27_v25  ;;  %535 = vmatprep.mubr.msk.f32.mxu1 %vm55_vm0, %v43_v26 }
  0x1d   :  { %512 = vmatmul.mubr.msk.f32.gmra.mrb[12].mxu0 %vm55_vm0, %v28_v27  ;;  %536 = vmatmul.mubr.msk.f32.gmra.mrb[12].mxu1 %vm55_vm0, %v44_v28 }
  0x1e   :  { %514 = vmatprep.mubr.msk.f32.mxu0 %vm55_vm0, %v29_v29  ;;  %538 = vmatprep.mubr.msk.f32.mxu1 %vm55_vm0, %v45_v30 }
  0x21   :  { %515 = vmatmul.mubr.msk.f32.gmra.mrb[14].mxu0 %vm55_vm0, %v30_v31  ;;  %539 = vmatmul.mubr.msk.f32.gmra.mrb[14].mxu1 %vm55_vm0, %v46_v32 }
  0xd8   :  { %v495_v34 = vpop.f32.mrb[0].mxu0  ;;  %v519_v35 = vpop.f32.mrb[0].mxu1 }
  0xd9   :  { %v224_v36 = vadd.f32 %v495_v34, %v727_v33  ;;  %v304_v37 = vadd.f32 %v519_v35, %v727_v33  ;;  %v218_v38 = vpop.f32.mrb[1].mxu0  ;;  %v298_v39 = vpop.f32.mrb[1].mxu1 }
  0xda   :  { %v219_v40 = vadd.f32 %v727_v33, %v218_v38  ;;  %v299_v41 = vadd.f32 %v727_v33, %v298_v39 }
  0xdb   :  { %378 = vst [vmem:[#allocation2 + $0x8] sm:$0xff] %v224_v36  ;;  %394 = vst [vmem:[#allocation2 + $0x88] sm:$0xff] %v304_v37 }
  0xdc   :  { %377 = vst [vmem:[#allocation2] sm:$0xff] %v219_v40  ;;  %393 = vst [vmem:[#allocation2 + $0x80] sm:$0xff] %v299_v41  ;;  %v498_v42 = vpop.f32.mrb[2].mxu0  ;;  %v522_v43 = vpop.f32.mrb[2].mxu1 }
  0xdd   :  { %v234_v44 = vadd.f32 %v498_v42, %v727_v33  ;;  %v314_v45 = vadd.f32 %v522_v43, %v727_v33  ;;  %v228_v46 = vpop.f32.mrb[3].mxu0  ;;  %v308_v47 = vpop.f32.mrb[3].mxu1 }
  0xde   :  { %v229_v48 = vadd.f32 %v727_v33, %v228_v46  ;;  %v309_v49 = vadd.f32 %v727_v33, %v308_v47 }
  0xdf   :  { %380 = vst [vmem:[#allocation2 + $0x18] sm:$0xff] %v234_v44  ;;  %396 = vst [vmem:[#allocation2 + $0x98] sm:$0xff] %v314_v45 }
  0xe0   :  { %379 = vst [vmem:[#allocation2 + $0x10] sm:$0xff] %v229_v48  ;;  %395 = vst [vmem:[#allocation2 + $0x90] sm:$0xff] %v309_v49  ;;  %v501_v50 = vpop.f32.mrb[4].mxu0  ;;  %v525_v51 = vpop.f32.mrb[4].mxu1 }
  0xe1   :  { %v244_v52 = vadd.f32 %v501_v50, %v727_v33  ;;  %v324_v53 = vadd.f32 %v525_v51, %v727_v33  ;;  %v238_v54 = vpop.f32.mrb[5].mxu0  ;;  %v318_v55 = vpop.f32.mrb[5].mxu1 }
  0xe2   :  { %v239_v56 = vadd.f32 %v727_v33, %v238_v54  ;;  %v319_v57 = vadd.f32 %v727_v33, %v318_v55 }
  0xe3   :  { %382 = vst [vmem:[#allocation2 + $0x28] sm:$0xff] %v244_v52  ;;  %398 = vst [vmem:[#allocation2 + $0xa8] sm:$0xff] %v324_v53 }
  0xe4   :  { %381 = vst [vmem:[#allocation2 + $0x20] sm:$0xff] %v239_v56  ;;  %397 = vst [vmem:[#allocation2 + $0xa0] sm:$0xff] %v319_v57  ;;  %v504_v58 = vpop.f32.mrb[6].mxu0  ;;  %v528_v59 = vpop.f32.mrb[6].mxu1 }
  0xe5   :  { %v254_v60 = vadd.f32 %v504_v58, %v727_v33  ;;  %v334_v61 = vadd.f32 %v528_v59, %v727_v33  ;;  %v248_v62 = vpop.f32.mrb[7].mxu0  ;;  %v328_v63 = vpop.f32.mrb[7].mxu1 }
  0xe6   :  { %v249_v0 = vadd.f32 %v727_v33, %v248_v62  ;;  %v329_v1 = vadd.f32 %v727_v33, %v328_v63 }
  0xe7   :  { %384 = vst [vmem:[#allocation2 + $0x38] sm:$0xff] %v254_v60  ;;  %400 = vst [vmem:[#allocation2 + $0xb8] sm:$0xff] %v334_v61 }
  0xe8   :  { %383 = vst [vmem:[#allocation2 + $0x30] sm:$0xff] %v249_v0  ;;  %399 = vst [vmem:[#allocation2 + $0xb0] sm:$0xff] %v329_v1  ;;  %v507_v2 = vpop.f32.mrb[8].mxu0  ;;  %v531_v3 = vpop.f32.mrb[8].mxu1 }
  0xe9   :  { %v264_v4 = vadd.f32 %v507_v2, %v727_v33  ;;  %v344_v5 = vadd.f32 %v531_v3, %v727_v33  ;;  %v258_v6 = vpop.f32.mrb[9].mxu0  ;;  %v338_v7 = vpop.f32.mrb[9].mxu1 }
  0xea   :  { %v259_v8 = vadd.f32 %v727_v33, %v258_v6  ;;  %v339_v9 = vadd.f32 %v727_v33, %v338_v7 }
  0xeb   :  { %386 = vst [vmem:[#allocation2 + $0x48] sm:$0xff] %v264_v4  ;;  %402 = vst [vmem:[#allocation2 + $0xc8] sm:$0xff] %v344_v5 }
  0xec   :  { %385 = vst [vmem:[#allocation2 + $0x40] sm:$0xff] %v259_v8  ;;  %401 = vst [vmem:[#allocation2 + $0xc0] sm:$0xff] %v339_v9  ;;  %v510_v10 = vpop.f32.mrb[10].mxu0  ;;  %v534_v11 = vpop.f32.mrb[10].mxu1 }
  0xed   :  { %v274_v12 = vadd.f32 %v510_v10, %v727_v33  ;;  %v354_v13 = vadd.f32 %v534_v11, %v727_v33  ;;  %v268_v14 = vpop.f32.mrb[11].mxu0  ;;  %v348_v15 = vpop.f32.mrb[11].mxu1 }
  0xee   :  { %v269_v16 = vadd.f32 %v727_v33, %v268_v14  ;;  %v349_v17 = vadd.f32 %v727_v33, %v348_v15 }
  0xef   :  { %388 = vst [vmem:[#allocation2 + $0x58] sm:$0xff] %v274_v12  ;;  %404 = vst [vmem:[#allocation2 + $0xd8] sm:$0xff] %v354_v13 }
  0xf0   :  { %387 = vst [vmem:[#allocation2 + $0x50] sm:$0xff] %v269_v16  ;;  %403 = vst [vmem:[#allocation2 + $0xd0] sm:$0xff] %v349_v17  ;;  %v513_v18 = vpop.f32.mrb[12].mxu0  ;;  %v537_v19 = vpop.f32.mrb[12].mxu1 }
  0xf1   :  { %v284_v20 = vadd.f32 %v513_v18, %v727_v33  ;;  %v364_v21 = vadd.f32 %v537_v19, %v727_v33  ;;  %v278_v22 = vpop.f32.mrb[13].mxu0  ;;  %v358_v23 = vpop.f32.mrb[13].mxu1 }
  0xf2   :  { %v279_v24 = vadd.f32 %v727_v33, %v278_v22  ;;  %v359_v25 = vadd.f32 %v727_v33, %v358_v23 }
  0xf3   :  { %390 = vst [vmem:[#allocation2 + $0x68] sm:$0xff] %v284_v20  ;;  %406 = vst [vmem:[#allocation2 + $0xe8] sm:$0xff] %v364_v21 }
  0xf4   :  { %389 = vst [vmem:[#allocation2 + $0x60] sm:$0xff] %v279_v24  ;;  %405 = vst [vmem:[#allocation2 + $0xe0] sm:$0xff] %v359_v25  ;;  %v516_v26 = vpop.f32.mrb[14].mxu0  ;;  %v540_v27 = vpop.f32.mrb[14].mxu1 }
  0xf5   :  { %v294_v28 = vadd.f32 %v516_v26, %v727_v33  ;;  %v374_v29 = vadd.f32 %v540_v27, %v727_v33  ;;  %v288_v30 = vpop.f32.mrb[15].mxu0  ;;  %v368_v31 = vpop.f32.mrb[15].mxu1 }
  0xf6   :  { %v289_v32 = vadd.f32 %v727_v33, %v288_v30  ;;  %v369_v34 = vadd.f32 %v727_v33, %v368_v31 }
  0xf7   :  { %392 = vst [vmem:[#allocation2 + $0x78] sm:$0xff] %v294_v28  ;;  %408 = vst [vmem:[#allocation2 + $0xf8] sm:$0xff] %v374_v29 }
  0xf8   :  { %391 = vst [vmem:[#allocation2 + $0x70] sm:$0xff] %v289_v32  ;;  %407 = vst [vmem:[#allocation2 + $0xf0] sm:$0xff] %v369_v34 }
  0xf9   :  { %557 = shalt.err (!%p554_p4)
}
  0xfa   :  { %s558_s26 = scalar_lea.hbm %s776_s3, 4096 }
  0xfb   :  { %p559_p5 = scmp.ne.s32.totalorder %s776_s3, %s558_s26  ;;  %p562_p6 = scmp.lt.u32.totalorder %s558_s26, %s776_s3 }
  0xfd   :  { %p564_p7 = pnand %p562_p6, %p559_p5 }
  0xff   :  { %567 = shalt.err (!%p564_p7)
}
 0x100   :  { %s571_s4 = smov 128   ;;  %s572_s5 = smov 8  }
 0x101   :  { %420 = dma.vmem_to_hbm [thread:$0]  %s415_s2, 4096, %s776_s3, [#allocation3], %s571_s4, %s571_s4, %s572_s5  }
 0x102   :  { %568 = dma.done.wait [#allocation3], 4096  }
 0x103   :  { %569 = vsyncadd [#allocation3], 4294963200 }
 0x104   :  { %424 = vsyncpa [#allocation3], 1 }

</bundles_post_ra>
